<compile_context>
chip_gen: v6e
topology: v6e:2x2x1
jax: 0.10.0
libtpu: 0.0.40
codegen_flags: <defaults>
</compile_context>

<pallas_src>
import functools

import jax
import jax.numpy as jnp
from jax.experimental import pallas as pl
from jax.experimental.pallas import tpu as pltpu


def _conv1x1_kernel_vpu(x_ref, w_ref, b_ref, o_ref, *, c_in, nb, widen):
    """Tiny-channel path: unrolled VPU multiply-adds (no MXU).

    x_ref: (nb, C_in, T)  w_ref: (C_out, C_in)  b_ref: (C_out, 1)  o_ref: (nb, C_out, T)
    """
    w = w_ref[...]
    if widen:
        w = w.astype(jnp.float32)
    b = b_ref[...].astype(jnp.float32)
    for n in range(nb):                               # static unroll over batch block
        x = x_ref[n]                                  # (C_in, T)
        if widen:
            x = x.astype(jnp.float32)
        acc = (w[:, 0:1] * x[0:1, :]).astype(jnp.float32)   # (C_out, T)
        for c in range(1, c_in):                      # static unroll over C_in
            acc = acc + (w[:, c:c + 1] * x[c:c + 1, :]).astype(jnp.float32)
        o_ref[n] = (acc + b).astype(o_ref.dtype)


def _conv1x1_kernel_mxu(x_ref, w_ref, b_ref, o_ref, *, nb):
    """General path: per-image MXU matmul with f32 accumulation."""
    w = w_ref[...]
    b = b_ref[...].astype(jnp.float32)
    for n in range(nb):                               # static unroll over batch block
        acc = jnp.dot(w, x_ref[n], preferred_element_type=jnp.float32)
        o_ref[n] = (acc + b).astype(o_ref.dtype)


def _tpu_vmem_capacity_bytes():
    try:
        return int(pltpu.get_tpu_info().vmem_capacity_bytes)
    except Exception:
        return 128 * 1024 * 1024          # v5e/v6e physical; conservative fallback


def _pick_tiles(N, HW, C_in, C_out, dtype_bytes, vmem_cap, *,
                target_step_bytes=2 << 20,    # in+out HBM traffic per grid step
                max_lanes=32768, max_nb=32):
    """Choose (batch_block, hw_tile): big lane-dense blocks, VMEM-budgeted."""
    vmem_budget = min(16 << 20, vmem_cap // 4)

    traffic_per_lane = (C_in + C_out) * dtype_bytes                      # in + out per lane column
    # double-buffered in+out blocks + f32 intermediates of the unrolled kernel
    vmem_per_lane = 2 * traffic_per_lane + (3 * C_out + 2 * C_in) * 4
    w_bytes = C_out * C_in * dtype_bytes + C_out * 4                     # resident weight + bias

    lanes_target = max(128, target_step_bytes // traffic_per_lane)
    lanes_vmem = max(128, (vmem_budget - w_bytes) // max(vmem_per_lane, 1))
    lanes = int(min(lanes_target, lanes_vmem, max_lanes))

    if HW <= lanes:
        hw_tile = HW                                   # full-extent lane block (always legal)
        nb = max(1, min(N, max_nb, lanes // max(HW, 1)))
    else:
        hw_tile = max(128, (lanes // 128) * 128)       # 128-aligned lane tile
        nb = 1

    # v7x has 2 TensorCores: keep >=2 parallel grid steps whenever possible.
    if pl.cdiv(N, nb) * pl.cdiv(HW, hw_tile) < 2:
        if N >= 2:
            nb = (N + 1) // 2                          # -> 2 batch blocks
        elif HW >= 256:
            hw_tile = pl.cdiv(HW, 256) * 128           # -> 2 lane blocks, 128-aligned

    return nb, hw_tile


def linear_1x1_conv(x_nchw, weight, bias):
    """1x1 Conv2d with bias, equivalent to torch.nn.Conv2d(c_in, c_out, 1).

    x_nchw: (N, C_in, H, W)
    weight: (C_out, C_in, 1, 1)   (PyTorch conv weight layout)
    bias:   (C_out,)
    returns (N, C_out, H, W)
    """
    N, C_in, H, W = x_nchw.shape
    C_out = weight.shape[0]
    HW = H * W
    dtype_bytes = jnp.dtype(x_nchw.dtype).itemsize

    # Free (contiguous) reshapes only -- no transposes, no padding copies.
    x = x_nchw.reshape(N, C_in, HW)
    w = weight.reshape(C_out, C_in)
    b = bias.reshape(C_out, 1)

    vmem_cap = _tpu_vmem_capacity_bytes()
    nb, hw_tile = _pick_tiles(N, HW, C_in, C_out, dtype_bytes, vmem_cap)
    grid = (pl.cdiv(N, nb), pl.cdiv(HW, hw_tile))

    small_channels = (C_in <= 8) and (C_out <= 16)
    if small_channels:
        kernel = functools.partial(
            _conv1x1_kernel_vpu, c_in=C_in, nb=nb,
            widen=(x_nchw.dtype == jnp.float32))
    else:
        kernel = functools.partial(_conv1x1_kernel_mxu, nb=nb)

    # Honest per-call VMEM footprint -> explicit scoped limit.
    in_blk = nb * C_in * hw_tile * dtype_bytes
    out_blk = nb * C_out * hw_tile * dtype_bytes
    temps = (3 * C_out + 2 * C_in) * hw_tile * 4
    footprint = 2 * (in_blk + out_blk) + C_out * C_in * dtype_bytes + C_out * 4 + temps
    vmem_limit = int(min(max(2 * footprint + (2 << 20), 8 << 20), vmem_cap // 2))

    cost = pl.CostEstimate(
        flops=2 * N * HW * C_in * C_out,
        transcendentals=0,
        bytes_accessed=(N * HW * (C_in + C_out) + C_out * C_in + C_out) * dtype_bytes)

    out = pl.pallas_call(
        kernel,
        out_shape=jax.ShapeDtypeStruct((N, C_out, HW), x_nchw.dtype),
        grid_spec=pltpu.PrefetchScalarGridSpec(
            num_scalar_prefetch=0,
            grid=grid,
            in_specs=[
                # activations: (nb, C_in, hw_tile) block, lane dim = H*W tile
                pl.BlockSpec((nb, C_in, hw_tile), lambda n, j: (n, 0, j)),
                # grid-invariant weight / bias blocks (stay resident in VMEM)
                pl.BlockSpec((C_out, C_in), lambda n, j: (0, 0)),
                pl.BlockSpec((C_out, 1), lambda n, j: (0, 0)),
            ],
            out_specs=pl.BlockSpec((nb, C_out, hw_tile), lambda n, j: (n, 0, j)),
        ),
        compiler_params=pltpu.CompilerParams(
            dimension_semantics=("parallel", "parallel"),
            vmem_limit_bytes=vmem_limit),
        cost_estimate=cost,
    )(x, w, b)

    return out.reshape(N, C_out, H, W)


if __name__ == "__main__":
    key = jax.random.PRNGKey(0)
    kx, kw, kb = jax.random.split(key, 3)

    N, C_in, C_out, H, W = 2, 4, 8, 16, 16
    x = jax.random.normal(kx, (N, C_in, H, W), dtype=jnp.float32)
    weight = jax.random.normal(kw, (C_out, C_in, 1, 1), dtype=jnp.float32) * 0.1
    bias = jax.random.normal(kb, (C_out,), dtype=jnp.float32) * 0.1

    out = jax.block_until_ready(linear_1x1_conv(x, weight, bias))

    # Pure-JAX reference (same math as PyTorch 1x1 conv + bias)
    ref = jnp.einsum("nchw,oc->nohw", x, weight.reshape(C_out, C_in)) \
        + bias.reshape(1, C_out, 1, 1)
    assert out.shape == (N, C_out, H, W)
    assert jnp.allclose(out, ref, atol=1e-5, rtol=1e-5)

    print("KERNEL_OK")
</pallas_src>

<mosaic_0001>
module attributes {stable_mosaic.version = 11 : i64} {
  func.func @_conv1x1_kernel_vpu(%arg0: i32, %arg1: i32, %arg2: memref<1x4x256xf32, #tpu.memory_space<vmem>>, %arg3: memref<8x4xf32, #tpu.memory_space<vmem>>, %arg4: memref<8x1xf32, #tpu.memory_space<vmem>>, %arg5: memref<1x8x256xf32, #tpu.memory_space<vmem>>) attributes {dimension_semantics = [#tpu.dimension_semantics<parallel>, #tpu.dimension_semantics<parallel>], iteration_bounds = array<i64: 2, 1>, scalar_prefetch = 0 : i64, scratch_operands = 0 : i64, tpu.core_type = #tpu.core_type<tc>, window_params = [{transform_indices = @transform_0, window_bounds = array<i64: 1, 4, 256>}, {pipeline_mode = #tpu.pipeline_mode<synchronous>, transform_indices = @transform_1, window_bounds = array<i64: 8, 4>}, {pipeline_mode = #tpu.pipeline_mode<synchronous>, transform_indices = @transform_2, window_bounds = array<i64: 8, 1>}, {transform_indices = @transform_3, window_bounds = array<i64: 1, 8, 256>}]} {
    %c0 = arith.constant 0 : index
    %c0_0 = arith.constant 0 : index
    %0 = vector.load %arg3[%c0, %c0_0] : memref<8x4xf32, #tpu.memory_space<vmem>>, vector<8x4xf32>
    %c0_1 = arith.constant 0 : index
    %c0_2 = arith.constant 0 : index
    %1 = vector.load %arg4[%c0_1, %c0_2] : memref<8x1xf32, #tpu.memory_space<vmem>>, vector<8x1xf32>
    %c0_3 = arith.constant 0 : index
    %c0_4 = arith.constant 0 : index
    %c0_5 = arith.constant 0 : index
    %2 = vector.load %arg2[%c0_3, %c0_4, %c0_5] : memref<1x4x256xf32, #tpu.memory_space<vmem>>, vector<1x4x256xf32>
    %3 = vector.shape_cast %2 : vector<1x4x256xf32> to vector<4x256xf32>
    %4 = vector.extract_strided_slice %0 {offsets = [0, 0], sizes = [8, 1], strides = [1, 1]} : vector<8x4xf32> to vector<8x1xf32>
    %5 = vector.extract_strided_slice %3 {offsets = [0, 0], sizes = [1, 256], strides = [1, 1]} : vector<4x256xf32> to vector<1x256xf32>
    %6 = vector.broadcast %4 : vector<8x1xf32> to vector<8x256xf32>
    %7 = vector.broadcast %5 : vector<1x256xf32> to vector<8x256xf32>
    %8 = arith.mulf %6, %7 : vector<8x256xf32>
    %9 = vector.extract_strided_slice %0 {offsets = [0, 1], sizes = [8, 1], strides = [1, 1]} : vector<8x4xf32> to vector<8x1xf32>
    %10 = vector.extract_strided_slice %3 {offsets = [1, 0], sizes = [1, 256], strides = [1, 1]} : vector<4x256xf32> to vector<1x256xf32>
    %11 = vector.broadcast %9 : vector<8x1xf32> to vector<8x256xf32>
    %12 = vector.broadcast %10 : vector<1x256xf32> to vector<8x256xf32>
    %13 = arith.mulf %11, %12 : vector<8x256xf32>
    %14 = arith.addf %8, %13 : vector<8x256xf32>
    %15 = vector.extract_strided_slice %0 {offsets = [0, 2], sizes = [8, 1], strides = [1, 1]} : vector<8x4xf32> to vector<8x1xf32>
    %16 = vector.extract_strided_slice %3 {offsets = [2, 0], sizes = [1, 256], strides = [1, 1]} : vector<4x256xf32> to vector<1x256xf32>
    %17 = vector.broadcast %15 : vector<8x1xf32> to vector<8x256xf32>
    %18 = vector.broadcast %16 : vector<1x256xf32> to vector<8x256xf32>
    %19 = arith.mulf %17, %18 : vector<8x256xf32>
    %20 = arith.addf %14, %19 : vector<8x256xf32>
    %21 = vector.extract_strided_slice %0 {offsets = [0, 3], sizes = [8, 1], strides = [1, 1]} : vector<8x4xf32> to vector<8x1xf32>
    %22 = vector.extract_strided_slice %3 {offsets = [3, 0], sizes = [1, 256], strides = [1, 1]} : vector<4x256xf32> to vector<1x256xf32>
    %23 = vector.broadcast %21 : vector<8x1xf32> to vector<8x256xf32>
    %24 = vector.broadcast %22 : vector<1x256xf32> to vector<8x256xf32>
    %25 = arith.mulf %23, %24 : vector<8x256xf32>
    %26 = arith.addf %20, %25 : vector<8x256xf32>
    %27 = vector.broadcast %1 : vector<8x1xf32> to vector<8x256xf32>
    %28 = arith.addf %26, %27 : vector<8x256xf32>
    %c0_6 = arith.constant 0 : index
    %c0_7 = arith.constant 0 : index
    %c0_8 = arith.constant 0 : index
    %29 = vector.load %arg5[%c0_6, %c0_7, %c0_8] : memref<1x8x256xf32, #tpu.memory_space<vmem>>, vector<1x8x256xf32>
    %30 = vector.shape_cast %29 : vector<1x8x256xf32> to vector<8x256xf32>
    %31 = vector.shape_cast %28 : vector<8x256xf32> to vector<1x8x256xf32>
    tpu.vector_store %arg5[%c0_6, %c0_7, %c0_8], %31 {strides = array<i32>} : memref<1x8x256xf32, #tpu.memory_space<vmem>>, vector<1x8x256xf32>,
    return
  }
  func.func @transform_0(%arg0: i32, %arg1: i32) -> (i32, i32, i32) {
    %c0_i32 = arith.constant 0 : i32
    %c0_i32_0 = arith.constant 0 : i32
    return %arg0, %c0_i32, %arg1 : i32, i32, i32
  }
  func.func @transform_1(%arg0: i32, %arg1: i32) -> (i32, i32) {
    %c0_i32 = arith.constant 0 : i32
    %c0_i32_0 = arith.constant 0 : i32
    %c0_i32_1 = arith.constant 0 : i32
    return %c0_i32, %c0_i32_0 : i32, i32
  }
  func.func @transform_2(%arg0: i32, %arg1: i32) -> (i32, i32) {
    %c0_i32 = arith.constant 0 : i32
    %c0_i32_0 = arith.constant 0 : i32
    %c0_i32_1 = arith.constant 0 : i32
    return %c0_i32, %c0_i32_0 : i32, i32
  }
  func.func @transform_3(%arg0: i32, %arg1: i32) -> (i32, i32, i32) {
    %c0_i32 = arith.constant 0 : i32
    %c0_i32_0 = arith.constant 0 : i32
    return %arg0, %c0_i32, %arg1 : i32, i32, i32
  }
}

</mosaic_0001>

<bundles_post_ra>
// kernel: tpu_custom_call.1
= control target key start
LH: loop header
LB: loop body
LE: loop exit
PB: predicated region body
PF: predicated region fallthrough
CT: control target
= control target key end

     0   :  { %8 = vsyncpa [#allocation3], 0  ;;  %s707_s0 = inlined_call_operand.vmem [shape: f32[2,4,256], index: 0, kind: input, shape index: {}]   ;;  %s708_s1 = inlined_call_operand.vmem [shape: f32[8,4], index: 1, kind: input, shape index: {}]   ;;  %s709_s2 = inlined_call_operand.vmem [shape: f32[8,1], index: 2, kind: input, shape index: {}]   ;;  %s710_s3 = inlined_call_operand.hbm [shape: f32[2,8,256], index: 3, kind: output, shape index: {}]  }
   0x1   :  { %10 = vsyncpa [#allocation3 + $0x1], 0  ;;  %s592_s12 = smov 0   ;;  %s594_s13 = smov 0  }
   0x2   :  { %s596_s14 = smov 0   ;;  %s598_s15 = smov 0  }
   0x3   :  { %s600_s16 = smov 0   ;;  %s602_s17 = smov 0  }
   0x4 LB: > { %s409_s18 = sadd.s32 4294967295, %s565_s17   ;;  %s410_s19 = sadd.s32 4294967294, %s565_s17   ;;  %s565_s17 = sphi %s602_s17, %s16_s17   ;;  %s561_s16 = sphi %s600_s16, %s717_s16   ;;  %s557_s15 = sphi %s598_s15, %s716_s15   ;;  %s553_s14 = sphi %s596_s14, %s715_s14   ;;  %s549_s13 = sphi %s594_s13, %s714_s13   ;;  %s545_s12 = sphi %s592_s12, %s713_s12  }
   0x5   : > { %s28_s20 = sadd.s32 1, %s561_s16  ;;  %s107_s21 = sadd.s32 1, %s553_s14 }
   0x6   : > { %p30_p0 = scmp.ge.s32.totalorder %s28_s20, 2  ;;  %p117_p1 = scmp.ne.s32.totalorder %s553_s14, %s549_s13 }
   0x7   : > { %p118_p2 = scmp.eq.s32.totalorder %s409_s18, 1  ;;  %p123_p3 = scmp.ne.s32.totalorder %s549_s13, %s545_s12 }
   0x8   : > { %s719_s20 = smov (%p30_p0, %s28_s20), 0  ;;  %p124_p5 = scmp.eq.s32.totalorder %s410_s19, 1 }
   0x9   : > { %p632_p4 = por %p118_p2, %p117_p1  ;;  %s102_s23 = ssub.s32 %s561_s16, %s719_s20 }
   0xa   : > { %p413_p6 = scmp.ge.s32.totalorder %s565_s17, 1  ;;  %p105_p7 = scmp.eq.s32.totalorder %s102_s23, 0 }
   0xb   : > { %p639_p8 = por %p124_p5, %p123_p3  ;;  %p161_p9 = scmp.lt.s32.totalorder %s565_s17, 3 }
   0xc   : > { %s645_s25 = scalar_select %p105_p7, %s553_s14, %s107_s21  }
   0xd   : > { %p162_p10 = pnand %p413_p6, %p161_p9 }
   0xe   : > { %p190_p11 = scmp.lt.s32.totalorder (!%p162_p10), %s557_s15, 1  ;;  %s186_s8 = sand.u32 (!%p162_p10), 1, %s549_s13  }
   0xf   : > { %165 = sbr.rel (%p162_p10) target bundleno = 174 (0xae), region = 32  ;;  %s414_s9 = sshll.u32 (!%p162_p10), %s186_s8, 4 }
  0x10   : > { %s423_s10 = sshll.u32 (!%p162_p10), %s557_s15, 8  ;;  %s188_s11 = scalar_lea.vmem (!%p162_p10), [#allocation2], %s414_s9 }
  0x11   : > { %s333_s18 = sshll.u32 (!%p162_p10), %s188_s11, 4  ;;  %s665_s23 = scalar_lea.hbm (!%p162_p10), %s710_s3, %s423_s10  ;;  %s334_s18 = int_to_ptr.vmem [resolvable:$true] %s333_s18 }
  0x12   : > { %s317_s26 = scalar_lea.sflag (!%p162_p10), [#allocation3], %s186_s8  ;;  %s489_s27 = scalar_lea.vmem (!%p162_p10), %s334_s18, 256 }
  0x13   : > { %p490_p12 = scmp.ne.s32.totalorder (!%p162_p10), %s334_s18, %s489_s27 }
  0x14   : > { %v200_v0 = vld [vmem:[%s708_s1] sm:$0xff]  ;;  %v567_v1 = vmov 0   ;;  %v568_v2 = vmov 2   ;;  %v569_v3 = vmov 1   ;;  %v570_v4 = vmov 3   ;;  %s191_s30 = scalar_select %p190_p11, %s557_s15, 1 }
  0x15   : > { %483 = vset.pattern.permute.xlu0 %v567_v1  ;;  %485 = vset.pattern.permute.xlu1 %v568_v2  ;;  %v201_v5 = vld [vmem:[%s709_s2] sm:$0xff]  ;;  %v209_v6 = vlaneseq  ;;  %p491_p13 = pnand %p490_p12, %p632_p4  ;;  %s571_s15 = smov [#allocation2]  }
  0x16   : > { %205 = vperm.xlu0 %483, %v200_v0   ;;  %256 = vperm.xlu1 %485, %v200_v0   ;;  %s422_s4 = sshll.u32 %s191_s30, 3  ;;  %s493_s28 = sshll.u32 %s571_s15, 4  ;;  %s494_s28 = int_to_ptr.vmem [resolvable:$false] %s493_s28 }
  0x17   : > { %v210_v7 = vshrl.u32 %v209_v6, 7  ;;  %s197_s7 = scalar_lea.vmem %s707_s0, %s422_s4  ;;  %p492_p0 = pneg %p491_p13 }
  0x18   : > { %v202_v12 = vld [vmem:[%s197_s7] sm:$0xff]  ;;  %s495_s29 = scalar_lea.vmem %s494_s28, 512  ;;  %p496_p1 = scmp.lt.s32.totalorder %s334_s18, %s494_s28 }
  0x19   : > { %v211_v8 = vsub.s32 0, %v210_v7  ;;  %v215_v9 = vsub.s32 4, %v210_v7  ;;  %v235_v10 = vsub.s32 1, %v210_v7  ;;  %v239_v11 = vsub.s32 5, %v210_v7  ;;  %p497_p2 = scmp.lt.s32.totalorder %s495_s29, %s489_s27 }
  0x1a   : > { %484 = vset.pattern.permute.xlu0 %v569_v3  ;;  %486 = vset.pattern.permute.xlu1 %v570_v4  ;;  %v261_v13 = vsub.s32 2, %v210_v7  ;;  %v265_v14 = vsub.s32 6, %v210_v7  ;;  %v287_v15 = vsub.s32 3, %v210_v7  ;;  %v291_v16 = vsub.s32 7, %v210_v7 }
  0x1b   : > { %230 = vperm.xlu0 %484, %v200_v0   ;;  %282 = vperm.xlu1 %486, %v200_v0   ;;  %v212_v17 = vrot.slane %v202_v12, %v211_v8  ;;  %v216_v18 = vrot.slane %v202_v12, %v215_v9  ;;  %v236_v19 = vrot.slane %v202_v12, %v235_v10  ;;  %p498_p3 = por %p497_p2, %p496_p1 }
  0x1c   : > { %v240_v20 = vrot.slane %v202_v12, %v239_v11  ;;  %v262_v21 = vrot.slane %v202_v12, %v261_v13  ;;  %v266_v22 = vrot.slane %v202_v12, %v265_v14  ;;  %v288_v25 = vrot.slane %v202_v12, %v287_v15 }
  0x1d   : > { %v292_v26 = vrot.slane %v202_v12, %v291_v16  ;;  %v222_v27 = vrot.slane %v212_v17, %v211_v8  ;;  %v226_v28 = vrot.slane %v216_v18, %v211_v8  ;;  %v246_v29 = vrot.slane %v236_v19, %v235_v10  ;;  %p499_p5 = pnand %p498_p3, %p492_p0 }
  0x1e   : > { %v250_v30 = vrot.slane %v240_v20, %v235_v10  ;;  %v272_v31 = vrot.slane %v262_v21, %v261_v13  ;;  %v276_v32 = vrot.slane %v266_v22, %v261_v13  ;;  %v298_v33 = vrot.slane %v288_v25, %v287_v15 }
  0x1f   : > { %487 = vset.pattern.permute.xlu1 %v567_v1  ;;  %488 = vset.pattern.permute.xlu0 %v567_v1  ;;  %v302_v34 = vrot.slane %v292_v26, %v287_v15 }
  0x20   : > { %309 = vperm.xlu1 %487, %v201_v5  }
  0x91   : > { %v206_v23 = vpop.permute.xlu0 %205  ;;  %v257_v24 = vpop.permute.xlu1 %256 }
  0x92   : > { %v227_v37 = vmul.f32 %v222_v27, %v206_v23  ;;  %v228_v38 = vmul.f32 %v226_v28, %v206_v23  ;;  %v277_v41 = vmul.f32 %v272_v31, %v257_v24  ;;  %v278_v42 = vmul.f32 %v276_v32, %v257_v24 }
  0x96   : > { %v231_v35 = vpop.permute.xlu0 %230  ;;  %v283_v36 = vpop.permute.xlu1 %282 }
  0x97   : > { %v251_v39 = vmul.f32 %v246_v29, %v231_v35  ;;  %v252_v40 = vmul.f32 %v250_v30, %v231_v35  ;;  %v303_v45 = vmul.f32 %v298_v33, %v283_v36  ;;  %v304_v46 = vmul.f32 %v302_v34, %v283_v36 }
  0x99   : > { %v253_v43 = vadd.f32 %v251_v39, %v227_v37  ;;  %v254_v44 = vadd.f32 %v252_v40, %v228_v38 }
  0x9b   : > { %v279_v47 = vadd.f32 %v277_v41, %v253_v43  ;;  %v280_v48 = vadd.f32 %v278_v42, %v254_v44  ;;  %v310_v49 = vpop.permute.xlu1 %309 }
  0x9d   : > { %v305_v50 = vadd.f32 %v303_v45, %v279_v47  ;;  %v306_v51 = vadd.f32 %v304_v46, %v280_v48 }
  0x9f   : > { %v312_v52 = vadd.f32 %v310_v49, %v305_v50  ;;  %v313_v53 = vadd.f32 %v310_v49, %v306_v51 }
  0xa1   : > { %314 = vst [vmem:[%s188_s11] sm:$0xff] %v312_v52  ;;  %315 = vst [vmem:[%s188_s11 + $0x8] sm:$0xff] %v313_v53 }
  0xa2   : > { %502 = shalt.err (!%p499_p5)
}
  0xa3   : > { %s503_s30 = scalar_lea.hbm %s665_s23, 256  ;;  %s507_s6 = scalar_lea.hbm %s710_s3, 512 }
  0xa4   : > { %p504_p6 = scmp.ne.s32.totalorder %s665_s23, %s503_s30  ;;  %p508_p10 = scmp.lt.s32.totalorder %s665_s23, %s710_s3 }
  0xa5   : > { %p509_p11 = scmp.lt.s32.totalorder %s507_s6, %s503_s30 }
  0xa6   : > { %p505_p7 = pnand %p504_p6, %p632_p4 }
  0xa7   : > { %p510_p12 = por %p509_p11, %p508_p10 }
  0xa8   : > { %p506_p9 = pneg %p505_p7 }
  0xaa   : > { %p511_p13 = pnand %p510_p12, %p506_p9 }
  0xac   : > { %514 = shalt.err (!%p511_p13)
}
  0xad   : > { %424 = dma.vmem_to_hbm [thread:$0]  (%p632_p4), %s334_s18, 256, %s665_s23, %s317_s26  }
  0xae PF: > { %p430_p0 = scmp.ge.s32.totalorder %s565_s17, 2  ;;  %s345_s9 = sand.u32 1, %s545_s12  }
  0xaf   : > { %s346_s10 = scalar_lea.sflag [#allocation3], %s345_s9 }
  0xb0   : > { %p427_p1 = pnand %p430_p0, %p639_p8 }
  0xb2   : > { %p428_p2 = pneg %p427_p1 }
  0xb4   : > { %540 = dma.done.wait (%p428_p2), %s346_s10, 256  }
  0xb5   : > { %542 = vsyncadd (%p428_p2), %s346_s10, 4294967040  ;;  %s16_s17 = sadd.s32 1, %s565_s17   ;;  %s713_s12 = smov %s549_s13 }
  0xb6   : > { %p13_p3 = scmp.ge.s32.totalorder %s16_s17, 4   ;;  %s714_s13 = smov %s553_s14 }
  0xb7   : > { %s715_s14 = smov %s645_s25  ;;  %s716_s15 = smov %s561_s16 }
  0xb8   : > { %s717_s16 = smov %s719_s20  ;;  %15 = sbr.rel (!%p13_p3) target bundleno = 4 (0x4), region = 67 }
  0xbd   :  { %351 = vsyncpa [#allocation3], 1 }
  0xbe   :  { %353 = vsyncpa [#allocation3 + $0x1], 1 }

</bundles_post_ra>
